<compile_context>
chip_gen: v7x
topology: tpu7x:2x2x1
jax: 0.10.0
libtpu: 0.0.40
codegen_flags: <defaults>
</compile_context>

<pallas_src>
import functools

import jax
import jax.numpy as jnp
from jax.experimental import pallas as pl
from jax.experimental.pallas import tpu as pltpu

BN_EPS = 1e-5
_MAX_TILE_ROWS = 32768          # soft cap on packed rows per tile

_VMEM_CAP = None


def _round_up(x, m):
    return (x + m - 1) // m * m


def _vmem_capacity_bytes():
    """Physical VMEM per TensorCore, with safe fallbacks."""
    global _VMEM_CAP
    if _VMEM_CAP is not None:
        return _VMEM_CAP
    cap = None
    try:
        info = pltpu.get_tpu_info()
        cap = int(getattr(info, "vmem_capacity_bytes"))
    except Exception:
        cap = None
    if not cap or cap <= 0:
        try:
            kind = jax.devices()[0].device_kind.lower()
        except Exception:
            kind = ""
        if ("v5" in kind) or ("v6" in kind):
            cap = 128 * 1024 * 1024
        else:
            cap = 64 * 1024 * 1024          # conservative (v7x-sized) fallback
    _VMEM_CAP = cap
    return cap


# ----------------------------- kernels --------------------------------------


def _resident_kernel(*refs, have_fold, inv_n):
    """Single-pass kernel: x is fully resident in VMEM (read from HBM once)."""
    if have_fold:
        x_ref, piv_ref, fold_ref, w_ref, c_ref, o_ref = refs
    else:
        x_ref, piv_ref, w_ref, c_ref, o_ref = refs
        fold_ref = None
    x = x_ref[...].astype(jnp.float32)                        # (R, Dp)
    xc = x - piv_ref[...]                                     # pivot-centered
    ones = jnp.ones((1, x.shape[0]), dtype=jnp.float32)
    # Batch-axis reduction on the otherwise-idle MXU.
    s1 = jnp.dot(ones, xc, preferred_element_type=jnp.float32)        # (1, Dp)
    s2 = jnp.dot(ones, xc * xc, preferred_element_type=jnp.float32)   # (1, Dp)
    if fold_ref is not None:
        # Fold the p lane groups into per-feature totals (broadcast back to
        # every lane group) with one tiny matmul against kron(ones, eye).
        s1 = jnp.dot(s1, fold_ref[...], preferred_element_type=jnp.float32)
        s2 = jnp.dot(s2, fold_ref[...], preferred_element_type=jnp.float32)
    mu_c = s1 * inv_n
    var = jnp.maximum(s2 * inv_n - mu_c * mu_c, 0.0)
    inv_std = jax.lax.rsqrt(var + BN_EPS)
    xhat = (xc - mu_c) * inv_std                              # x - mu == xc - mu_c
    y = jnp.dot(xhat, w_ref[...], preferred_element_type=jnp.float32) + c_ref[...]
    o_ref[...] = y.astype(o_ref.dtype)


def _stats_kernel(x_ref, piv_ref, s1_ref, s2_ref):
    """Per-tile pivot-centered sum / sum-of-squares (megacore 'parallel')."""
    x = x_ref[...].astype(jnp.float32)                        # (TN, Dp)
    xc = x - piv_ref[...]
    ones = jnp.ones((1, x.shape[0]), dtype=jnp.float32)
    s1 = jnp.dot(ones, xc, preferred_element_type=jnp.float32)
    s2 = jnp.dot(ones, xc * xc, preferred_element_type=jnp.float32)
    s1_ref[...] = jnp.broadcast_to(s1, s1_ref.shape)
    s2_ref[...] = jnp.broadcast_to(s2, s2_ref.shape)


def _project_kernel(x_ref, w_ref, c_ref, o_ref):
    """y = x @ W'' + c''  (normalization already folded into W''/c'')."""
    x = x_ref[...].astype(jnp.float32)
    y = jnp.dot(x, w_ref[...], preferred_element_type=jnp.float32) + c_ref[...]
    o_ref[...] = y.astype(o_ref.dtype)


# ----------------------------- wrapper ---------------------------------------


@functools.partial(jax.jit, static_argnames=("block_rows",))
def multitask_block(x, gammas, betas, weights, biases, *, block_rows=None):
    """MultitaskBlock(n_hidden=0) forward.

    x       : (N, D)     input batch
    gammas  : (3, D)     BatchNorm1d weight per head
    betas   : (3, D)     BatchNorm1d bias per head
    weights : (3, 3, D)  Linear weight per head (PyTorch (out, in) layout)
    biases  : (3, 3)     Linear bias per head
    Returns (out1, out2, out3), each (N, 3).
    """
    n, d = x.shape
    n_heads, n_out = biases.shape                      # (3, 3)
    out_cols = n_heads * n_out                         # 9
    f32 = jnp.float32

    # ---- lane-packing geometry ------------------------------------------------
    if d >= 128:
        d_sub = _round_up(d, 128)
        p = 1
    else:
        d_sub = 8
        while d_sub < d:
            d_sub *= 2                                  # 8,16,32,64,128 — divides 128
        p = 128 // d_sub
    d_pack = d_sub * p                                  # multiple of 128
    out_w = out_cols * p                                # lane-dense output width

    # ---- fold BN affine into the Linear ---------------------------------------
    w_t = jnp.transpose(weights, (0, 2, 1)).astype(f32)            # (3, d, 3)
    w_fused = gammas.astype(f32)[:, :, None] * w_t                 # (3, d, 3)
    w9 = jnp.concatenate([w_fused[h] for h in range(n_heads)], axis=1)   # (d, 9)
    c9 = (jnp.einsum("hd,hdo->ho", betas.astype(f32), w_t)
          + biases.astype(f32)).reshape(-1)                        # (9,)
    w9p = jnp.pad(w9, ((0, d_sub - d), (0, 0)))                    # (d_sub, 9)

    # ---- pivot (numerical stability of the one-pass variance) -----------------
    x_cols = jnp.pad(x, ((0, 0), (0, d_sub - d))) if d_sub > d else x
    pivot_row = x_cols[0:1, :]                                     # (1, d_sub)
    pivot_sub = pivot_row[0].astype(f32)                           # (d_sub,)
    pivot_lane = jnp.tile(pivot_row.astype(f32), (1, p))           # (1, d_pack)

    # ---- generation-aware VMEM budget & tile sizing ----------------------------
    vmem_limit = int(_vmem_capacity_bytes() * 4 // 5)              # 20% headroom
    x_bpe = int(x.dtype.itemsize)
    out_lanes = _round_up(out_w, 128)
    # Conservative per packed-row VMEM: x double buffers + f32 temps + output
    # double buffer + f32 y temp (all lane-padded).
    row_bytes = (2 * x_bpe + 4 * 4) * d_pack + (2 * x_bpe + 4) * out_lanes
    tile_budget = (vmem_limit * 3) // 5

    n_pack_raw = -(-n // p)
    n_pack_min = _round_up(max(n_pack_raw, 1), 8)
    inv_n = 1.0 / float(n)

    use_resident = (block_rows is None and
                    n_pack_min * row_bytes + 2 * d_pack * d_pack * 4 <= tile_budget)

    if block_rows is not None:
        tn = max(8, (int(block_rows) // 8) * 8)
    else:
        tn = max(8, min(_MAX_TILE_ROWS, (tile_budget // row_bytes) // 8 * 8))
    tn = min(tn, n_pack_min)

    if use_resident:
        n_pack_pad = n_pack_min
    else:
        n_pack_pad = _round_up(n_pack_raw, tn)

    # ---- pad rows with the pivot (contributes 0 to centered sums), pack -------
    n_rows_pad = n_pack_pad * p
    if n_rows_pad > n:
        pad = jnp.broadcast_to(pivot_row, (n_rows_pad - n, d_sub)).astype(x.dtype)
        x_cols = jnp.concatenate([x_cols, pad], axis=0)
    xp = x_cols.reshape(n_pack_pad, d_pack)

    eye_p = jnp.eye(p, dtype=f32)

    if use_resident:
        # -------- single-read resident path (one grid point) -------------------
        w_bd = jnp.kron(eye_p, w9p)                                # (d_pack, out_w)
        c_bd = jnp.tile(c9, p)[None, :]                            # (1, out_w)

        in_specs = [
            pl.BlockSpec((n_pack_pad, d_pack), lambda i: (0, 0)),  # x (resident)
            pl.BlockSpec((1, d_pack), lambda i: (0, 0)),           # pivot
        ]
        args = [xp, pivot_lane]
        if p > 1:
            fold = jnp.kron(jnp.ones((p, p), f32), jnp.eye(d_sub, dtype=f32))
            in_specs.append(pl.BlockSpec((d_pack, d_pack), lambda i: (0, 0)))
            args.append(fold)
        in_specs += [
            pl.BlockSpec((d_pack, out_w), lambda i: (0, 0)),       # fused weights
            pl.BlockSpec((1, out_w), lambda i: (0, 0)),            # fused constants
        ]
        args += [w_bd, c_bd]

        cost = pl.CostEstimate(
            flops=2 * n_pack_pad * d_pack * (out_w + 2) + 6 * n_pack_pad * d_pack,
            transcendentals=d_pack,
            bytes_accessed=n_pack_pad * d_pack * x_bpe
            + n_pack_pad * out_w * x_bpe + d_pack * out_w * 4)

        out_pack = pl.pallas_call(
            functools.partial(_resident_kernel, have_fold=(p > 1), inv_n=inv_n),
            out_shape=jax.ShapeDtypeStruct((n_pack_pad, out_w), x.dtype),
            grid_spec=pltpu.PrefetchScalarGridSpec(
                num_scalar_prefetch=0,
                grid=(1,),
                in_specs=in_specs,
                out_specs=pl.BlockSpec((n_pack_pad, out_w), lambda i: (0, 0)),
            ),
            compiler_params=pltpu.CompilerParams(
                dimension_semantics=("arbitrary",),
                vmem_limit_bytes=vmem_limit),
            cost_estimate=cost,
        )(*args)
    else:
        # -------- large-N path: two 'parallel' passes (megacore on v7x) --------
        nt = n_pack_pad // tn

        # Pass 1: per-tile pivot-centered partial sum / sum-of-squares.
        s1_part, s2_part = pl.pallas_call(
            _stats_kernel,
            out_shape=(jax.ShapeDtypeStruct((nt, 8, d_pack), f32),
                       jax.ShapeDtypeStruct((nt, 8, d_pack), f32)),
            grid_spec=pltpu.PrefetchScalarGridSpec(
                num_scalar_prefetch=0,
                grid=(nt,),
                in_specs=[pl.BlockSpec((tn, d_pack), lambda i: (i, 0)),
                          pl.BlockSpec((1, d_pack), lambda i: (0, 0))],
                out_specs=(pl.BlockSpec((1, 8, d_pack), lambda i: (i, 0, 0)),
                           pl.BlockSpec((1, 8, d_pack), lambda i: (i, 0, 0))),
            ),
            compiler_params=pltpu.CompilerParams(
                dimension_semantics=("parallel",),
                vmem_limit_bytes=vmem_limit),
            cost_estimate=pl.CostEstimate(
                flops=6 * n_pack_pad * d_pack, transcendentals=0,
                bytes_accessed=n_pack_pad * d_pack * x_bpe),
        )(xp, pivot_lane)

        # Tiny XLA glue: reduce partials, fold lane groups, fold normalization
        # into the resident weights so pass 2 is a pure matmul + bias.
        s1 = s1_part[:, 0, :].sum(axis=0).reshape(p, d_sub).sum(axis=0)   # (d_sub,)
        s2 = s2_part[:, 0, :].sum(axis=0).reshape(p, d_sub).sum(axis=0)
        mu_c = s1 * inv_n
        var = jnp.maximum(s2 * inv_n - mu_c * mu_c, 0.0)
        inv_std = jax.lax.rsqrt(var + BN_EPS)
        w_norm = inv_std[:, None] * w9p                                   # (d_sub, 9)
        c_norm = c9 - ((pivot_sub + mu_c) * inv_std) @ w9p                # (9,)
        w_bd = jnp.kron(eye_p, w_norm)                                    # (d_pack, out_w)
        c_bd = jnp.tile(c_norm, p)[None, :]                               # (1, out_w)

        # Pass 2: lane-dense projection.
        out_pack = pl.pallas_call(
            _project_kernel,
            out_shape=jax.ShapeDtypeStruct((n_pack_pad, out_w), x.dtype),
            grid_spec=pltpu.PrefetchScalarGridSpec(
                num_scalar_prefetch=0,
                grid=(nt,),
                in_specs=[pl.BlockSpec((tn, d_pack), lambda i: (i, 0)),
                          pl.BlockSpec((d_pack, out_w), lambda i: (0, 0)),
                          pl.BlockSpec((1, out_w), lambda i: (0, 0))],
                out_specs=pl.BlockSpec((tn, out_w), lambda i: (i, 0)),
            ),
            compiler_params=pltpu.CompilerParams(
                dimension_semantics=("parallel",),
                vmem_limit_bytes=vmem_limit),
            cost_estimate=pl.CostEstimate(
                flops=2 * n_pack_pad * d_pack * out_w, transcendentals=0,
                bytes_accessed=(n_pack_pad * d_pack * x_bpe
                                + n_pack_pad * out_w * x_bpe
                                + d_pack * out_w * 4)),
        )(xp, w_bd, c_bd)

    out = out_pack.reshape(n_pack_pad * p, out_cols)[:n]
    return out[:, 0:3], out[:, 3:6], out[:, 6:9]


# ----------------------------- reference & tests ------------------------------


def _reference(x, gammas, betas, weights, biases):
    """Pure-JAX reference mirroring PyTorch training-mode BN + Linear."""
    mu = jnp.mean(x, axis=0, keepdims=True)
    var = jnp.mean((x - mu) ** 2, axis=0, keepdims=True)
    xhat = (x - mu) / jnp.sqrt(var + BN_EPS)
    outs = []
    for i in range(3):
        h = xhat * gammas[i][None, :] + betas[i][None, :]
        outs.append(h @ weights[i].T + biases[i][None, :])
    return tuple(outs)


def _check(x, gammas, betas, weights, biases, block_rows=None, tag=""):
    outs = multitask_block(x, gammas, betas, weights, biases,
                           block_rows=block_rows)
    jax.block_until_ready(outs)
    refs = _reference(x, gammas, betas, weights, biases)
    for o, r in zip(outs, refs):
        assert o.shape == r.shape, (tag, o.shape, r.shape)
        err = float(jnp.max(jnp.abs(o - r)))
        assert err < 2e-4, (tag, err)


if __name__ == "__main__":
    key = jax.random.PRNGKey(0)

    def make_params(k, d):
        kg, kb, kw, kbi = jax.random.split(k, 4)
        gammas = 1.0 + 0.1 * jax.random.normal(kg, (3, d), dtype=jnp.float32)
        betas = 0.1 * jax.random.normal(kb, (3, d), dtype=jnp.float32)
        weights = jax.random.normal(kw, (3, 3, d), dtype=jnp.float32) / jnp.sqrt(d)
        biases = 0.01 * jax.random.normal(kbi, (3, 3), dtype=jnp.float32)
        return gammas, betas, weights, biases

    k1, k2, k3, k4, kp1, kp2 = jax.random.split(key, 6)

    # dim_in = 32 head parameters (lane-packed, p = 4).
    D = 32
    g32, b32, w32, bi32 = make_params(kp1, D)

    # 1) Small batch -> resident single-read path (p = 4 packing).
    x1 = jax.random.normal(k1, (8, D), dtype=jnp.float32)
    _check(x1, g32, b32, w32, bi32, tag="resident_p4")

    # 2) Forced tiled two-pass path with row padding (N = 20, 8-row tiles).
    x2 = jax.random.normal(k2, (20, D), dtype=jnp.float32)
    _check(x2, g32, b32, w32, bi32, block_rows=8, tag="tiled_p4_pad")

    # 3) Multi-tile tiled path (nt > 1) with a shifted mean (stability check).
    x3 = 5.0 + jax.random.normal(k3, (300, D), dtype=jnp.float32)
    _check(x3, g32, b32, w32, bi32, block_rows=32, tag="tiled_p4_multitile")

    # 4) dim_in = 72 -> no packing (p = 1), resident path without the fold matmul.
    D2 = 72
    g72, b72, w72, bi72 = make_params(kp2, D2)
    x4 = jax.random.normal(k4, (24, D2), dtype=jnp.float32)
    _check(x4, g72, b72, w72, bi72, tag="resident_p1")

    print("KERNEL_OK")
</pallas_src>

<mosaic_0001>
module attributes {stable_mosaic.version = 11 : i64} {
  func.func @_resident_kernel(%arg0: i32, %arg1: memref<8x128xf32, #tpu.memory_space<vmem>>, %arg2: memref<1x128xf32, #tpu.memory_space<vmem>>, %arg3: memref<128x128xf32, #tpu.memory_space<vmem>>, %arg4: memref<128x36xf32, #tpu.memory_space<vmem>>, %arg5: memref<1x36xf32, #tpu.memory_space<vmem>>, %arg6: memref<8x36xf32, #tpu.memory_space<vmem>>) attributes {dimension_semantics = [#tpu.dimension_semantics<arbitrary>], iteration_bounds = array<i64: 1>, scalar_prefetch = 0 : i64, scratch_operands = 0 : i64, tpu.core_type = #tpu.core_type<tc>, window_params = [{pipeline_mode = #tpu.pipeline_mode<synchronous>, transform_indices = @transform_0, window_bounds = array<i64: 8, 128>}, {pipeline_mode = #tpu.pipeline_mode<synchronous>, transform_indices = @transform_1, window_bounds = array<i64: 1, 128>}, {pipeline_mode = #tpu.pipeline_mode<synchronous>, transform_indices = @transform_2, window_bounds = array<i64: 128, 128>}, {pipeline_mode = #tpu.pipeline_mode<synchronous>, transform_indices = @transform_3, window_bounds = array<i64: 128, 36>}, {pipeline_mode = #tpu.pipeline_mode<synchronous>, transform_indices = @transform_4, window_bounds = array<i64: 1, 36>}, {pipeline_mode = #tpu.pipeline_mode<synchronous>, transform_indices = @transform_5, window_bounds = array<i64: 8, 36>}]} {
    %c0 = arith.constant 0 : index
    %c0_0 = arith.constant 0 : index
    %0 = vector.load %arg1[%c0, %c0_0] : memref<8x128xf32, #tpu.memory_space<vmem>>, vector<8x128xf32>
    %c0_1 = arith.constant 0 : index
    %c0_2 = arith.constant 0 : index
    %1 = vector.load %arg2[%c0_1, %c0_2] : memref<1x128xf32, #tpu.memory_space<vmem>>, vector<1x128xf32>
    %2 = vector.broadcast %1 : vector<1x128xf32> to vector<8x128xf32>
    %3 = arith.subf %0, %2 : vector<8x128xf32>
    %cst = arith.constant 1.000000e+00 : f32
    %4 = vector.broadcast %cst : f32 to vector<1x8xf32>
    %cst_3 = arith.constant dense<0.000000e+00> : vector<1x128xf32>
    %5 = tpu.matmul %4, %3, %cst_3 {dimension_numbers = #tpu.dot_dimension_numbers<[1], [0], [0], [1], [0, 0, 1, 1], [], []>} : vector<1x8xf32>, vector<8x128xf32>, vector<1x128xf32> -> vector<1x128xf32>
    %6 = arith.mulf %3, %3 : vector<8x128xf32>
    %cst_4 = arith.constant dense<0.000000e+00> : vector<1x128xf32>
    %7 = tpu.matmul %4, %6, %cst_4 {dimension_numbers = #tpu.dot_dimension_numbers<[1], [0], [0], [1], [0, 0, 1, 1], [], []>} : vector<1x8xf32>, vector<8x128xf32>, vector<1x128xf32> -> vector<1x128xf32>
    %c0_5 = arith.constant 0 : index
    %c0_6 = arith.constant 0 : index
    %8 = vector.load %arg3[%c0_5, %c0_6] : memref<128x128xf32, #tpu.memory_space<vmem>>, vector<128x128xf32>
    %cst_7 = arith.constant dense<0.000000e+00> : vector<1x128xf32>
    %9 = tpu.matmul %5, %8, %cst_7 {dimension_numbers = #tpu.dot_dimension_numbers<[1], [0], [0], [1], [0, 0, 1, 1], [], []>} : vector<1x128xf32>, vector<128x128xf32>, vector<1x128xf32> -> vector<1x128xf32>
    %c0_8 = arith.constant 0 : index
    %c0_9 = arith.constant 0 : index
    %10 = vector.load %arg3[%c0_8, %c0_9] : memref<128x128xf32, #tpu.memory_space<vmem>>, vector<128x128xf32>
    %cst_10 = arith.constant dense<0.000000e+00> : vector<1x128xf32>
    %11 = tpu.matmul %7, %10, %cst_10 {dimension_numbers = #tpu.dot_dimension_numbers<[1], [0], [0], [1], [0, 0, 1, 1], [], []>} : vector<1x128xf32>, vector<128x128xf32>, vector<1x128xf32> -> vector<1x128xf32>
    %cst_11 = arith.constant 1.250000e-01 : f32
    %12 = vector.broadcast %cst_11 : f32 to vector<1x128xf32>
    %13 = arith.mulf %9, %12 : vector<1x128xf32>
    %cst_12 = arith.constant 1.250000e-01 : f32
    %14 = vector.broadcast %cst_12 : f32 to vector<1x128xf32>
    %15 = arith.mulf %11, %14 : vector<1x128xf32>
    %16 = arith.mulf %13, %13 : vector<1x128xf32>
    %17 = arith.subf %15, %16 : vector<1x128xf32>
    %cst_13 = arith.constant 0.000000e+00 : f32
    %18 = vector.broadcast %cst_13 : f32 to vector<1x128xf32>
    %19 = arith.maximumf %17, %18 : vector<1x128xf32>
    %cst_14 = arith.constant 9.99999974E-6 : f32
    %20 = vector.broadcast %cst_14 : f32 to vector<1x128xf32>
    %21 = arith.addf %19, %20 : vector<1x128xf32>
    %22 = math.rsqrt %21 : vector<1x128xf32>
    %23 = vector.broadcast %13 : vector<1x128xf32> to vector<8x128xf32>
    %24 = arith.subf %3, %23 : vector<8x128xf32>
    %25 = vector.broadcast %22 : vector<1x128xf32> to vector<8x128xf32>
    %26 = arith.mulf %24, %25 : vector<8x128xf32>
    %c0_15 = arith.constant 0 : index
    %c0_16 = arith.constant 0 : index
    %27 = vector.load %arg4[%c0_15, %c0_16] : memref<128x36xf32, #tpu.memory_space<vmem>>, vector<128x36xf32>
    %cst_17 = arith.constant dense<0.000000e+00> : vector<8x36xf32>
    %28 = tpu.matmul %26, %27, %cst_17 {dimension_numbers = #tpu.dot_dimension_numbers<[1], [0], [0], [1], [0, 0, 1, 1], [], []>} : vector<8x128xf32>, vector<128x36xf32>, vector<8x36xf32> -> vector<8x36xf32>
    %c0_18 = arith.constant 0 : index
    %c0_19 = arith.constant 0 : index
    %29 = vector.load %arg5[%c0_18, %c0_19] : memref<1x36xf32, #tpu.memory_space<vmem>>, vector<1x36xf32>
    %30 = vector.broadcast %29 : vector<1x36xf32> to vector<8x36xf32>
    %31 = arith.addf %28, %30 : vector<8x36xf32>
    %c0_20 = arith.constant 0 : index
    %c0_21 = arith.constant 0 : index
    %32 = vector.load %arg6[%c0_20, %c0_21] : memref<8x36xf32, #tpu.memory_space<vmem>>, vector<8x36xf32>
    tpu.vector_store %arg6[%c0_20, %c0_21], %31 {strides = array<i32>} : memref<8x36xf32, #tpu.memory_space<vmem>>, vector<8x36xf32>,
    return
  }
  func.func @transform_0(%arg0: i32) -> (i32, i32) {
    %c0_i32 = arith.constant 0 : i32
    %c0_i32_0 = arith.constant 0 : i32
    %c0_i32_1 = arith.constant 0 : i32
    return %c0_i32, %c0_i32_0 : i32, i32
  }
  func.func @transform_1(%arg0: i32) -> (i32, i32) {
    %c0_i32 = arith.constant 0 : i32
    %c0_i32_0 = arith.constant 0 : i32
    %c0_i32_1 = arith.constant 0 : i32
    return %c0_i32, %c0_i32_0 : i32, i32
  }
  func.func @transform_2(%arg0: i32) -> (i32, i32) {
    %c0_i32 = arith.constant 0 : i32
    %c0_i32_0 = arith.constant 0 : i32
    %c0_i32_1 = arith.constant 0 : i32
    return %c0_i32, %c0_i32_0 : i32, i32
  }
  func.func @transform_3(%arg0: i32) -> (i32, i32) {
    %c0_i32 = arith.constant 0 : i32
    %c0_i32_0 = arith.constant 0 : i32
    %c0_i32_1 = arith.constant 0 : i32
    return %c0_i32, %c0_i32_0 : i32, i32
  }
  func.func @transform_4(%arg0: i32) -> (i32, i32) {
    %c0_i32 = arith.constant 0 : i32
    %c0_i32_0 = arith.constant 0 : i32
    %c0_i32_1 = arith.constant 0 : i32
    return %c0_i32, %c0_i32_0 : i32, i32
  }
  func.func @transform_5(%arg0: i32) -> (i32, i32) {
    %c0_i32 = arith.constant 0 : i32
    %c0_i32_0 = arith.constant 0 : i32
    %c0_i32_1 = arith.constant 0 : i32
    return %c0_i32, %c0_i32_0 : i32, i32
  }
}

</mosaic_0001>

<bundles_post_ra>
// kernel: tile.15
= control target key start
LH: loop header
LB: loop body
LE: loop exit
PB: predicated region body
PF: predicated region fallthrough
CT: control target
= control target key end

     0   :  { %vm7_vm0 = vcmask 23552   ;;  %s30_s8 = smov 3   ;;  %vm13_vm1 = vcmask 72752   ;;  %vm19_vm2 = vcmask 48152   ;;  %s47_s0 = inlined_call_operand.vmem [shape: f32[3,3], index: 0, kind: input, shape index: {}]   ;;  %s48_s1 = inlined_call_operand.vmem [shape: f32[9], index: 1, kind: output, shape index: {}]  }
   0x1   :  { %v4_v0 = vld [vmem:[%s47_s0] sm:$0xf]  ;;  %s29_s0 = smov 6  }
   0x2   :  { %5 = vst [vmem:[#allocation1] sm:$0xf] %v4_v0 }
   0x9   :  { %v10_v1 = vld [vmem:[#allocation1 + $0x2] sm:$0x1]   ;;  %v6_v2 = vld [vmem:[#allocation1] sm:$0x1]   ;;  %v16_v3 = vld [vmem:[#allocation1 + $0x1] sm:$0x1]  }
   0xa   :  { %11 = vrot.lane.b32.xlu0 %v10_v1, %s29_s0  ;;  %8 = vst.msk [vmem:[#allocation0] sm:$0x1] %vm7_vm0, %v6_v2  }
   0xe   :  { %17 = vrot.lane.b32.xlu0 %v16_v3, %s30_s8 }
  0x7c   :  { %v12_v4 = vpop.permute.xlu0 %11  }
  0x7d   :  { %14 = vst.msk [vmem:[#allocation0] sm:$0x1] %vm13_vm1, %v12_v4  }
  0x80   :  { %v18_v5 = vpop.permute.xlu0 %17  }
  0x81   :  { %20 = vst.msk [vmem:[#allocation0] sm:$0x1] %vm19_vm2, %v18_v5  }
  0x88   :  { %v24_v6 = vld [vmem:[#allocation0] sm:$0x1] }
  0x89   :  { %26 = vst [vmem:[%s48_s1] sm:$0x1] %v24_v6 }

// kernel: tile.16
= control target key start
LH: loop header
LB: loop body
LE: loop exit
PB: predicated region body
PF: predicated region fallthrough
CT: control target
= control target key end

     0   :  { %s22_s0 = inlined_call_operand.vmem [shape: f32[9], index: 0, kind: input, shape index: {}]   ;;  %s23_s1 = inlined_call_operand.vmem [shape: f32[4,9], index: 1, kind: output, shape index: {}]  }
   0x1   :  { %v4_v0 = vld [vmem:[%s22_s0] ss:$0 sm:$0xff] }
   0x2   :  { %5 = vst [vmem:[%s23_s1] sm:$0xf] %v4_v0 }

// kernel: tile.17
= control target key start
LH: loop header
LB: loop body
LE: loop exit
PB: predicated region body
PF: predicated region fallthrough
CT: control target
= control target key end

     0   :  { %vm7_vm0 = vcmask 72704   ;;  %s37_s8 = smov 9   ;;  %s38_s9 = smov 18   ;;  %vm13_vm1 = vcmask 294104   ;;  %vm19_vm2 = vcmask 220304   ;;  %vm25_vm3 = vcmask 146504   ;;  %s55_s0 = inlined_call_operand.vmem [shape: f32[4,9], index: 0, kind: input, shape index: {}]   ;;  %s56_s1 = inlined_call_operand.vmem [shape: f32[1,36], index: 1, kind: output, shape index: {}]  }
   0x1   :  { %v4_v0 = vld [vmem:[%s55_s0] sm:$0xf]  ;;  %s36_s0 = smov 27  }
   0x2   :  { %5 = vst [vmem:[#allocation1] sm:$0xf] %v4_v0 }
   0x9   :  { %v10_v1 = vld [vmem:[#allocation1 + $0x3] sm:$0x1]   ;;  %v22_v2 = vld [vmem:[#allocation1 + $0x1] sm:$0x1]   ;;  %v6_v3 = vld [vmem:[#allocation1] sm:$0x1]  }
   0xa   :  { %11 = vrot.lane.b32.xlu0 %v10_v1, %s36_s0  ;;  %23 = vrot.lane.b32.xlu1 %v22_v2, %s37_s8  ;;  %v16_v4 = vld [vmem:[#allocation1 + $0x2] sm:$0x1]   ;;  %8 = vst.msk [vmem:[#allocation0] sm:$0x1] %vm7_vm0, %v6_v3  }
   0xe   :  { %17 = vrot.lane.b32.xlu0 %v16_v4, %s38_s9 }
  0x7c   :  { %v12_v5 = vpop.permute.xlu0 %11   ;;  %v24_v6 = vpop.permute.xlu1 %23  }
  0x7d   :  { %14 = vst.msk [vmem:[#allocation0] sm:$0x1] %vm13_vm1, %v12_v5  }
  0x80   :  { %v18_v7 = vpop.permute.xlu0 %17  }
  0x81   :  { %20 = vst.msk [vmem:[#allocation0] sm:$0x1] %vm19_vm2, %v18_v7  }
  0x82   :  { %26 = vst.msk [vmem:[#allocation0] sm:$0x1] %vm25_vm3, %v24_v6  }
  0x89   :  { %v30_v8 = vld [vmem:[#allocation0] sm:$0x1] }
  0x8a   :  { %32 = vst [vmem:[%s56_s1] sm:$0x1] %v30_v8 }

// kernel: multitask_block.1
= control target key start
LH: loop header
LB: loop body
LE: loop exit
PB: predicated region body
PF: predicated region fallthrough
CT: control target
= control target key end

     0   :  { %v698_v0 = vmov 0.0   ;;  %vm699_vm0 = vmmov 0   ;;  %vm29_vm1 = vcmask 64512   ;;  %v700_v5 = vmov 0.0|0.0   ;;  %s884_s0 = inlined_call_operand.vmem [shape: f32[8,128], index: 0, kind: input, shape index: {}]   ;;  %s885_s1 = inlined_call_operand.vmem [shape: f32[1,128], index: 1, kind: input, shape index: {}]   ;;  %s886_s2 = inlined_call_operand.vmem [shape: f32[128,128], index: 2, kind: input, shape index: {}]   ;;  %s887_s3 = inlined_call_operand.vmem [shape: f32[128,36], index: 3, kind: input, shape index: {}]   ;;  %s888_s4 = inlined_call_operand.vmem [shape: f32[1,36], index: 4, kind: input, shape index: {}]   ;;  %s889_s5 = inlined_call_operand.vmem [shape: f32[8,36], index: 5, kind: output, shape index: {}]  }
   0x1   :  { %505 = vmatprep.subr.mxu1 %v698_v0  ;;  %v20_v1 = vld [vmem:[%s884_s0] sm:$0xff]  ;;  %507 = vmatprep.mubr.msk.f32.mxu1 %vm699_vm0, %v698_v0  ;;  %v175_v6 = vld [vmem:[%s886_s2 + $0x8] sm:$0xff]  ;;  %v176_v9 = vld [vmem:[%s886_s2 + $0x10] sm:$0xff]  ;;  %v701_v11 = vmov 1.0   ;;  %vm440_vm2 = vcmask 293888  }
   0x2   :  { %v446_v2 = vld [vmem:[%s885_s1] ss:$0 sm:$0xff]  ;;  %620 = vmatprep.subr.bf16.mxu0 %v700_v5  ;;  %547 = vmatprep.mubr.msk.f32.mxu0 %vm699_vm0, %v698_v0  ;;  %v177_v10 = vld [vmem:[%s886_s2 + $0x18] sm:$0xff]  ;;  %v179_v14 = vld [vmem:[%s886_s2 + $0x28] sm:$0xff] }
   0x3   :  { %v174_v3 = vld [vmem:[%s886_s2] sm:$0xff]  ;;  %v744_v4 = vsub.f32 %v20_v1, %v446_v2  ;;  %v624_v12 = vpack.c.bf16 %v177_v10, %v176_v9  ;;  %v180_v16 = vld [vmem:[%s886_s2 + $0x30] sm:$0xff]  ;;  %v181_v17 = vld [vmem:[%s886_s2 + $0x38] sm:$0xff] }
   0x4   :  { %v621_v7 = vpack.c.bf16 %v175_v6, %v174_v3  ;;  %v178_v13 = vld [vmem:[%s886_s2 + $0x20] sm:$0xff]  ;;  %v630_v18 = vpack.c.bf16 %v181_v17, %v180_v16  ;;  %v183_v20 = vld [vmem:[%s886_s2 + $0x48] sm:$0xff]  ;;  %v184_v22 = vld [vmem:[%s886_s2 + $0x50] sm:$0xff]  ;;  %v337_v3 = vlaneseq }
   0x5   :  { %506 = vmatpush3.msra.mxu1 %v744_v4  ;;  %v103_v8 = vmul.f32 %v744_v4, %v744_v4  ;;  %v627_v15 = vpack.c.bf16 %v179_v14, %v178_v13  ;;  %v182_v19 = vld [vmem:[%s886_s2 + $0x40] sm:$0xff]  ;;  %v185_v23 = vld [vmem:[%s886_s2 + $0x58] sm:$0xff]  ;;  %v187_v26 = vld [vmem:[%s886_s2 + $0x68] sm:$0xff] }
   0x6   :  { %508 = vmatmul.mubr.msk.f32.vlgmr.msra.gmra.mrb[0].mxu1 %vm29_vm1, %v701_v11  ;;  %510 = vmatprep.subr.mxu1 %v698_v0  ;;  %v633_v21 = vpack.c.bf16 %v183_v20, %v182_v19  ;;  %v636_v24 = vpack.c.bf16 %v185_v23, %v184_v22  ;;  %v186_v25 = vld [vmem:[%s886_s2 + $0x60] sm:$0xff]  ;;  %v188_v28 = vld [vmem:[%s886_s2 + $0x70] sm:$0xff]  ;;  %v189_v29 = vld [vmem:[%s886_s2 + $0x78] sm:$0xff] }
   0x7   :  { %511 = vmatpush3.msra.mxu1 %v103_v8  ;;  %512 = vmatprep.mubr.msk.f32.mxu1 %vm699_vm0, %v698_v0  ;;  %v639_v27 = vpack.c.bf16 %v187_v26, %v186_v25  ;;  %v642_v30 = vpack.c.bf16 %v189_v29, %v188_v28  ;;  %v347_v31 = vld [vmem:[%s887_s3] sm:$0xff]  ;;  %v348_v32 = vld [vmem:[%s887_s3 + $0x8] sm:$0xff]  ;;  %v349_v38 = vld [vmem:[%s887_s3 + $0x10] sm:$0xff]  ;;  %v338_v8 = vshrl.u32 %v337_v3, 7 }
   0x8   :  { %622 = vmatpush3.bf16.msra.mxu0 %v621_v7  ;;  %644 = vmatprep.subr.bf16.mxu1 %v700_v5  ;;  %v669_v33 = vpack.c.bf16 %v348_v32, %v347_v31  ;;  %v350_v39 = vld [vmem:[%s887_s3 + $0x18] sm:$0xff]  ;;  %v351_v41 = vld [vmem:[%s887_s3 + $0x20] sm:$0xff]  ;;  %v352_v42 = vld [vmem:[%s887_s3 + $0x28] sm:$0xff] }
   0x9   :  { %623 = vmatprep.subr.bf16.mxu0 %v700_v5  ;;  %v672_v40 = vpack.c.bf16 %v350_v39, %v349_v38  ;;  %v675_v43 = vpack.c.bf16 %v352_v42, %v351_v41  ;;  %v353_v44 = vld [vmem:[%s887_s3 + $0x30] sm:$0xff]  ;;  %v354_v45 = vld [vmem:[%s887_s3 + $0x38] sm:$0xff]  ;;  %v355_v47 = vld [vmem:[%s887_s3 + $0x40] sm:$0xff]  ;;  %v339_v9 = vsub.s32 0, %v338_v8 }
   0xa   :  { %513 = vmatmul.mubr.msk.f32.vlgmr.msra.gmra.mrb[2].mxu1 %vm29_vm1, %v701_v11  ;;  %v678_v46 = vpack.c.bf16 %v354_v45, %v353_v44  ;;  %v356_v48 = vld [vmem:[%s887_s3 + $0x48] sm:$0xff]  ;;  %v357_v50 = vld [vmem:[%s887_s3 + $0x50] sm:$0xff]  ;;  %v358_v51 = vld [vmem:[%s887_s3 + $0x58] sm:$0xff] }
   0xb   :  { %646 = vmatpush3.bf16.msra.mxu1 %v621_v7  ;;  %582 = vmatprep.mubr.msk.f32.mxu1 %vm699_vm0, %v698_v0  ;;  %v681_v49 = vpack.c.bf16 %v356_v48, %v355_v47  ;;  %v684_v52 = vpack.c.bf16 %v358_v51, %v357_v50  ;;  %v359_v53 = vld [vmem:[%s887_s3 + $0x60] sm:$0xff]  ;;  %v360_v54 = vld [vmem:[%s887_s3 + $0x68] sm:$0xff]  ;;  %v361_v56 = vld [vmem:[%s887_s3 + $0x70] sm:$0xff] }
   0xc   :  { %625 = vmatpush3.bf16.msra.mxu0 %v624_v12  ;;  %647 = vmatprep.subr.bf16.mxu1 %v700_v5  ;;  %v687_v55 = vpack.c.bf16 %v360_v54, %v359_v53  ;;  %v362_v57 = vld [vmem:[%s887_s3 + $0x78] sm:$0xff]  ;;  %v449_v14 = vld [vmem:[%s888_s4] ss:$0 sm:$0xff] }
   0xd   :  { %626 = vmatprep.subr.bf16.mxu0 %v700_v5  ;;  %v690_v58 = vpack.c.bf16 %v362_v57, %v361_v56 }
   0xf   :  { %649 = vmatpush3.bf16.msra.mxu1 %v624_v12 }
  0x10   :  { %628 = vmatpush3.bf16.msra.mxu0 %v627_v15  ;;  %650 = vmatprep.subr.bf16.mxu1 %v700_v5 }
  0x11   :  { %629 = vmatprep.subr.bf16.mxu0 %v700_v5 }
  0x13   :  { %652 = vmatpush3.bf16.msra.mxu1 %v627_v15 }
  0x14   :  { %631 = vmatpush3.bf16.msra.mxu0 %v630_v18  ;;  %653 = vmatprep.subr.bf16.mxu1 %v700_v5 }
  0x15   :  { %632 = vmatprep.subr.bf16.mxu0 %v700_v5 }
  0x17   :  { %655 = vmatpush3.bf16.msra.mxu1 %v630_v18 }
  0x18   :  { %634 = vmatpush3.bf16.msra.mxu0 %v633_v21  ;;  %656 = vmatprep.subr.bf16.mxu1 %v700_v5 }
  0x19   :  { %635 = vmatprep.subr.bf16.mxu0 %v700_v5 }
  0x1b   :  { %658 = vmatpush3.bf16.msra.mxu1 %v633_v21 }
  0x1c   :  { %637 = vmatpush3.bf16.msra.mxu0 %v636_v24  ;;  %659 = vmatprep.subr.bf16.mxu1 %v700_v5 }
  0x1d   :  { %638 = vmatprep.subr.bf16.mxu0 %v700_v5 }
  0x1f   :  { %661 = vmatpush3.bf16.msra.mxu1 %v636_v24 }
  0x20   :  { %640 = vmatpush3.bf16.msra.mxu0 %v639_v27  ;;  %662 = vmatprep.subr.bf16.mxu1 %v700_v5 }
  0x21   :  { %641 = vmatprep.subr.bf16.mxu0 %v700_v5 }
  0x23   :  { %664 = vmatpush3.bf16.msra.mxu1 %v639_v27 }
  0x24   :  { %643 = vmatpush3.bf16.msra.mxu0 %v642_v30  ;;  %665 = vmatprep.subr.bf16.mxu1 %v700_v5 }
  0x25   :  { %668 = vmatprep.subr.bf16.mxu0 %v700_v5 }
  0x27   :  { %667 = vmatpush3.bf16.msra.mxu1 %v642_v30 }
  0xd9   :  { %v99_v34 = vpop.f32.mrb[0].mxu1 }
  0xda   :  { %v509_v35 = vpop.f32.mrb[1].mxu1  ;;  %548 = vmatmul.mubr.f32.vlgmr.msra.gmra.mrb[0].mxu0 %v99_v34 }
  0xdb   :  { %670 = vmatpush3.bf16.msra.mxu0 %v669_v33  ;;  %617 = vmatprep.mubr.msk.f32.mxu0 %vm699_vm0, %v698_v0 }
  0xdc   :  { %671 = vmatprep.subr.bf16.mxu0 %v700_v5 }
  0xdd   :  { %v170_v36 = vpop.f32.mrb[2].mxu1 }
  0xde   :  { %v514_v37 = vpop.f32.mrb[3].mxu1  ;;  %583 = vmatmul.mubr.f32.vlgmr.msra.gmra.mrb[4].mxu1 %v170_v36 }
  0xdf   :  { %673 = vmatpush3.bf16.msra.mxu0 %v672_v40 }
  0xe0   :  { %674 = vmatprep.subr.bf16.mxu0 %v700_v5 }
  0xe3   :  { %676 = vmatpush3.bf16.msra.mxu0 %v675_v43 }
  0xe4   :  { %677 = vmatprep.subr.bf16.mxu0 %v700_v5 }
  0xe7   :  { %679 = vmatpush3.bf16.msra.mxu0 %v678_v46 }
  0xe8   :  { %680 = vmatprep.subr.bf16.mxu0 %v700_v5 }
  0xeb   :  { %682 = vmatpush3.bf16.msra.mxu0 %v681_v49 }
  0xec   :  { %683 = vmatprep.subr.bf16.mxu0 %v700_v5 }
  0xef   :  { %685 = vmatpush3.bf16.msra.mxu0 %v684_v52 }
  0xf0   :  { %686 = vmatprep.subr.bf16.mxu0 %v700_v5 }
  0xf3   :  { %688 = vmatpush3.bf16.msra.mxu0 %v687_v55 }
  0xf4   :  { %689 = vmatprep.subr.bf16.mxu0 %v700_v5 }
  0xf7   :  { %691 = vmatpush3.bf16.msra.mxu0 %v690_v58 }
 0x1ad   :  { %v256_v59 = vpop.f32.mrb[0].mxu0 }
 0x1ae   :  { %v330_v60 = vmul.f32 0.125, %v256_v59  ;;  %v549_v61 = vpop.f32.mrb[1].mxu0 }
 0x1b0   :  { %v332_v63 = vmul.f32 %v330_v60, %v330_v60  ;;  %v340_v10 = vrot.slane %v330_v60, %v339_v9 }
 0x1b1   :  { %v326_v62 = vpop.f32.mrb[4].mxu1 }
 0x1b2   :  { %v331_v0 = vmul.f32 0.125, %v326_v62  ;;  %v584_v1 = vpop.f32.mrb[5].mxu1  ;;  %v341_v12 = vsub.f32 %v744_v4, %v340_v10 }
 0x1b4   :  { %v333_v2 = vsub.f32 %v331_v0, %v332_v63 }
 0x1b6   :  { %v334_v6 = vmax.f32 %v333_v2, 0.0 }
 0x1b8   :  { %v335_v7 = vadd.f32 1e-05, %v334_v6 }
 0x1ba   :  { %696 = vrsqrt.f32 %v335_v7 }
 0x1c4   :  { %v697_v11 = vpop.eup %696 }
 0x1c5   :  { %v345_v5 = vrot.slane %v697_v11, %v339_v9 }
 0x1c7   :  { %v346_v13 = vmul.f32 %v345_v5, %v341_v12 }
 0x1c9   :  { %618 = vmatmul.mubr.f32.vlgmr.msra.gmra.mrb[2].mxu0 %v346_v13 }
 0x29c   :  { %v436_v15 = vpop.f32.mrb[2].mxu0 }
 0x29d   :  { %v437_v16 = vadd.f32 %v449_v14, %v436_v15  ;;  %v619_v17 = vpop.f32.mrb[3].mxu0 }
 0x29f   :  { %441 = vst.msk [vmem:[%s889_s5] sm:$0xff] %vm440_vm2, %v437_v16 }

</bundles_post_ra>
